<compile_context>
chip_gen: v7x
topology: tpu7x:2x2x1
jax: 0.10.0
libtpu: 0.0.40
codegen_flags: <defaults>
</compile_context>

<pallas_src>
import math
import jax
import jax.numpy as jnp
from jax.experimental import pallas as pl
from jax.experimental.pallas import tpu as pltpu

# ------------------------- config (mirrors `args`) -------------------------
STATE_DIM = 16
ACTION_DIM = 4
HIDDEN_DIM = 32
NUM_LAYERS = 2          # args.num_layers
LOG_STD_MIN = -20.0     # args.LOG_STD_MIN
LOG_STD_MAX = 2.0       # args.LOG_STD_MAX
BATCH = 8

LANES = 128             # f32 lane tile width
SUBLANES = 8            # f32 sublane tile height
LARGE_TB = 256          # batch tile once many env states are batched per call


# --------------------------- parameter init --------------------------------
def xavier_uniform(key, fan_in, fan_out, gain=1.0):
    # matches nn.init.xavier_uniform_ (gain=1); PyTorch weight is (out, in),
    # we return the transpose (in, out) for x @ W.
    limit = gain * math.sqrt(6.0 / (fan_in + fan_out))
    w = jax.random.uniform(key, (fan_out, fan_in), jnp.float32, -limit, limit)
    return w.T  # (in, out)


def init_actor_params(key):
    params = []
    dims = [STATE_DIM] + [HIDDEN_DIM] * NUM_LAYERS
    keys = jax.random.split(key, NUM_LAYERS + 2)
    # feature layers
    for i in range(NUM_LAYERS):
        w = xavier_uniform(keys[i], dims[i], dims[i + 1])
        b = jnp.zeros((1, dims[i + 1]), jnp.float32)
        params.append((w, b))
    # mean head
    wm = xavier_uniform(keys[NUM_LAYERS], HIDDEN_DIM, ACTION_DIM)
    bm = jnp.zeros((1, ACTION_DIM), jnp.float32)
    # log_std head
    ws = xavier_uniform(keys[NUM_LAYERS + 1], HIDDEN_DIM, ACTION_DIM)
    bs = jnp.zeros((1, ACTION_DIM), jnp.float32)
    return params, (wm, bm), (ws, bs)


# --------------------------- parameter packing ------------------------------
def pack_actor_params(feature_params, mean_params, logstd_params):
    """Packs all Actor parameters into ONE f32[(L+1)*128, 128] full-tile slab.

    Block li (rows [li*128, (li+1)*128)) holds layer li's (in,out) weights in
    the top-left corner, its bias as contraction row `in_dim`, and (for ReLU
    feature layers) a 1.0 at [in_dim, out_dim] so the constant-1 lane carries
    forward through the network.  The head block is concat(wm, ws) / (bm, bs)
    so mean and log_std come out of a single matmul.
    """
    wm, bm = mean_params
    ws, bs = logstd_params
    w_head = jnp.concatenate([wm, ws], axis=1)   # (H, 2A)
    b_head = jnp.concatenate([bm, bs], axis=1)   # (1, 2A)

    layers = [(w, b, True) for (w, b) in feature_params] + [(w_head, b_head, False)]

    blocks = []
    for w, b, carry_one in layers:
        in_dim, out_dim = w.shape
        blk = jnp.zeros((LANES, LANES), jnp.float32)
        blk = blk.at[:in_dim, :out_dim].set(w.astype(jnp.float32))
        blk = blk.at[in_dim, :out_dim].set(b[0].astype(jnp.float32))  # folded bias
        if carry_one:
            blk = blk.at[in_dim, out_dim].set(1.0)  # propagate constant-1 lane
        blocks.append(blk)
    return jnp.concatenate(blocks, axis=0)          # ((L+1)*128, 128)


# ------------------------------ Pallas kernel -------------------------------
def make_actor_kernel(num_feature_layers, action_dim, log_std_min, log_std_max):
    def actor_kernel(state_ref, params_ref, out_ref):
        # state_ref: (TB, 128) with state in lanes [0,S), 1.0 at lane S.
        x = state_ref[...]

        # feature layers: one full-tile MXU pass each (bias folded), then ReLU.
        for li in range(num_feature_layers):
            w = params_ref[li * LANES:(li + 1) * LANES, :]           # (128, 128)
            x = jnp.maximum(
                jnp.dot(x, w, preferred_element_type=jnp.float32), 0.0)

        # fused (mean | log_std) head: one more full-tile MXU pass.
        wh = params_ref[num_feature_layers * LANES:
                        (num_feature_layers + 1) * LANES, :]          # (128, 128)
        head = jnp.dot(x, wh, preferred_element_type=jnp.float32)     # (TB, 128)

        # clip+exp on the whole tile (clip bounds every lane so exp is safe),
        # then select: lanes [0, A) -> mean, lanes [A, 128) -> std / junk.
        lane = jax.lax.broadcasted_iota(jnp.int32, head.shape, dimension=1)
        stdv = jnp.exp(jnp.clip(head, log_std_min, log_std_max))
        out_ref[...] = jnp.where(lane >= action_dim, stdv, head)      # (TB, 128)

    return actor_kernel


def actor_forward(state, param_slab):
    """Full Actor.forward on TPU in a single Pallas kernel.

    Returns (mean, std) just like the PyTorch module.
    """
    batch = state.shape[0]

    # Pick the batch tile: one grid step for small batches, 256-row tiles
    # (parallel semantics -> both v7x TensorCores) once many env states are
    # batched per call.
    pb = ((batch + SUBLANES - 1) // SUBLANES) * SUBLANES
    if pb >= LARGE_TB:
        tb = LARGE_TB
        pb = ((pb + tb - 1) // tb) * tb
    else:
        tb = pb
    grid = (pb // tb,)

    # Lane-dense, bias-carrying input tile: lanes [0,S)=state, lane S = 1.0.
    xin = jnp.zeros((pb, LANES), jnp.float32)
    xin = xin.at[:batch, :STATE_DIM].set(state.astype(jnp.float32))
    xin = xin.at[:, STATE_DIM].set(1.0)

    n_blocks = NUM_LAYERS + 1
    kernel = make_actor_kernel(NUM_LAYERS, ACTION_DIM, LOG_STD_MIN, LOG_STD_MAX)

    flops = 2 * pb * n_blocks * LANES * LANES
    bytes_accessed = 4 * (pb * LANES + param_slab.size + pb * LANES)

    out = pl.pallas_call(
        kernel,
        out_shape=jax.ShapeDtypeStruct((pb, LANES), jnp.float32),
        grid=grid,
        in_specs=[
            pl.BlockSpec((tb, LANES), lambda i: (i, 0)),              # state tile
            pl.BlockSpec((n_blocks * LANES, LANES), lambda i: (0, 0)),  # weights
        ],
        out_specs=pl.BlockSpec((tb, LANES), lambda i: (i, 0)),
        compiler_params=pltpu.CompilerParams(
            dimension_semantics=("parallel",)),
        cost_estimate=pl.CostEstimate(
            flops=flops,
            transcendentals=pb * LANES,
            bytes_accessed=bytes_accessed),
    )(xin, param_slab)

    out = out[:batch]
    return out[:, :ACTION_DIM], out[:, ACTION_DIM:2 * ACTION_DIM]

    # TODO(synk): the dominant cost at this size is the pallas_call launch;
    # if this runs inside a rollout loop, fuse Actor.sample() (rsample with
    # pltpu.prng_*, tanh squash, scale/bias, log-prob) into this same kernel
    # and batch many environment states per call. forward() only is here.


# ------------------------------ reference ----------------------------------
def actor_forward_ref(state, feature_params, mean_params, logstd_params):
    x = state
    for (w, b) in feature_params:
        x = jnp.maximum(x @ w + b, 0.0)
    mean = x @ mean_params[0] + mean_params[1]
    log_std = jnp.clip(x @ logstd_params[0] + logstd_params[1],
                       LOG_STD_MIN, LOG_STD_MAX)
    return mean, jnp.exp(log_std)


# TODO(synk): the PyTorch NaN/Inf debug `print`s in forward() have no clean
# in-kernel equivalent; they are diagnostics only and do not affect outputs.

if __name__ == "__main__":
    key = jax.random.PRNGKey(0)
    pkey, skey = jax.random.split(key)
    feature_params, mean_params, logstd_params = init_actor_params(pkey)
    state = jax.random.normal(skey, (BATCH, STATE_DIM), jnp.float32)

    param_slab = pack_actor_params(feature_params, mean_params, logstd_params)

    mean, std = actor_forward(state, param_slab)
    jax.block_until_ready((mean, std))

    mean_ref, std_ref = actor_forward_ref(state, feature_params,
                                          mean_params, logstd_params)
    assert mean.shape == (BATCH, ACTION_DIM) and std.shape == (BATCH, ACTION_DIM)
    assert jnp.allclose(mean, mean_ref, atol=1e-5, rtol=1e-5)
    assert jnp.allclose(std, std_ref, atol=1e-5, rtol=1e-5)
    print("KERNEL_OK")
</pallas_src>

<mosaic_0001>
module attributes {stable_mosaic.version = 11 : i64} {
  func.func @actor_kernel(%arg0: i32, %arg1: memref<8x128xf32, #tpu.memory_space<vmem>>, %arg2: memref<384x128xf32, #tpu.memory_space<vmem>>, %arg3: memref<8x128xf32, #tpu.memory_space<vmem>>) attributes {dimension_semantics = [#tpu.dimension_semantics<parallel>], iteration_bounds = array<i64: 1>, scalar_prefetch = 0 : i64, scratch_operands = 0 : i64, tpu.core_type = #tpu.core_type<tc>, window_params = [{transform_indices = @transform_0, window_bounds = array<i64: 8, 128>}, {pipeline_mode = #tpu.pipeline_mode<synchronous>, transform_indices = @transform_1, window_bounds = array<i64: 384, 128>}, {transform_indices = @transform_2, window_bounds = array<i64: 8, 128>}]} {
    %c0 = arith.constant 0 : index
    %c0_0 = arith.constant 0 : index
    %0 = vector.load %arg1[%c0, %c0_0] : memref<8x128xf32, #tpu.memory_space<vmem>>, vector<8x128xf32>
    %c0_1 = arith.constant 0 : index
    %c0_2 = arith.constant 0 : index
    %1 = vector.load %arg2[%c0_1, %c0_2] : memref<384x128xf32, #tpu.memory_space<vmem>>, vector<128x128xf32>
    %cst = arith.constant dense<0.000000e+00> : vector<8x128xf32>
    %2 = tpu.matmul %0, %1, %cst {dimension_numbers = #tpu.dot_dimension_numbers<[1], [0], [0], [1], [0, 0, 1, 1], [], []>} : vector<8x128xf32>, vector<128x128xf32>, vector<8x128xf32> -> vector<8x128xf32>
    %cst_3 = arith.constant 0.000000e+00 : f32
    %3 = vector.broadcast %cst_3 : f32 to vector<8x128xf32>
    %4 = arith.maximumf %2, %3 : vector<8x128xf32>
    %c128 = arith.constant 128 : index
    %c0_4 = arith.constant 0 : index
    %5 = vector.load %arg2[%c128, %c0_4] : memref<384x128xf32, #tpu.memory_space<vmem>>, vector<128x128xf32>
    %cst_5 = arith.constant dense<0.000000e+00> : vector<8x128xf32>
    %6 = tpu.matmul %4, %5, %cst_5 {dimension_numbers = #tpu.dot_dimension_numbers<[1], [0], [0], [1], [0, 0, 1, 1], [], []>} : vector<8x128xf32>, vector<128x128xf32>, vector<8x128xf32> -> vector<8x128xf32>
    %cst_6 = arith.constant 0.000000e+00 : f32
    %7 = vector.broadcast %cst_6 : f32 to vector<8x128xf32>
    %8 = arith.maximumf %6, %7 : vector<8x128xf32>
    %c256 = arith.constant 256 : index
    %c0_7 = arith.constant 0 : index
    %9 = vector.load %arg2[%c256, %c0_7] : memref<384x128xf32, #tpu.memory_space<vmem>>, vector<128x128xf32>
    %cst_8 = arith.constant dense<0.000000e+00> : vector<8x128xf32>
    %10 = tpu.matmul %8, %9, %cst_8 {dimension_numbers = #tpu.dot_dimension_numbers<[1], [0], [0], [1], [0, 0, 1, 1], [], []>} : vector<8x128xf32>, vector<128x128xf32>, vector<8x128xf32> -> vector<8x128xf32>
    %11 = tpu.iota {dimensions = array<i32: 1>} : vector<8x128xi32>
    %cst_9 = arith.constant -2.000000e+01 : f32
    %cst_10 = arith.constant 2.000000e+00 : f32
    %12 = vector.broadcast %cst_9 : f32 to vector<8x128xf32>
    %13 = arith.maximumf %12, %10 : vector<8x128xf32>
    %14 = vector.broadcast %cst_10 : f32 to vector<8x128xf32>
    %15 = arith.minimumf %14, %13 : vector<8x128xf32>
    %16 = math.exp %15 : vector<8x128xf32>
    %c4_i32 = arith.constant 4 : i32
    %17 = vector.broadcast %c4_i32 : i32 to vector<8x128xi32>
    %18 = arith.cmpi sge, %11, %17 : vector<8x128xi32>
    %19 = arith.select %18, %16, %10 : vector<8x128xi1>, vector<8x128xf32>
    %c0_11 = arith.constant 0 : index
    %c0_12 = arith.constant 0 : index
    %20 = vector.load %arg3[%c0_11, %c0_12] : memref<8x128xf32, #tpu.memory_space<vmem>>, vector<8x128xf32>
    tpu.vector_store %arg3[%c0_11, %c0_12], %19 {strides = array<i32>} : memref<8x128xf32, #tpu.memory_space<vmem>>, vector<8x128xf32>,
    return
  }
  func.func @transform_0(%arg0: i32) -> (i32, i32) {
    %c0_i32 = arith.constant 0 : i32
    %c0_i32_0 = arith.constant 0 : i32
    return %arg0, %c0_i32 : i32, i32
  }
  func.func @transform_1(%arg0: i32) -> (i32, i32) {
    %c0_i32 = arith.constant 0 : i32
    %c0_i32_0 = arith.constant 0 : i32
    %c0_i32_1 = arith.constant 0 : i32
    return %c0_i32, %c0_i32_0 : i32, i32
  }
  func.func @transform_2(%arg0: i32) -> (i32, i32) {
    %c0_i32 = arith.constant 0 : i32
    %c0_i32_0 = arith.constant 0 : i32
    return %arg0, %c0_i32 : i32, i32
  }
}

</mosaic_0001>

<bundles_post_ra>
// kernel: tpu_custom_call.1
= control target key start
LH: loop header
LB: loop body
LE: loop exit
PB: predicated region body
PF: predicated region fallthrough
CT: control target
= control target key end

     0   :  { %7 = vsyncpa [#allocation3], 0  ;;  %s730_s0 = inlined_call_operand.hbm [shape: f32[8,128], index: 0, kind: input, shape index: {}]   ;;  %s731_s1 = inlined_call_operand.hbm [shape: f32[384,128], index: 1, kind: input, shape index: {}]   ;;  %s732_s2 = inlined_call_operand.hbm [shape: f32[8,128], index: 2, kind: output, shape index: {}]  }
   0x1   :  { %8 = vsyncpa [#allocation6], 0 }
   0x2   :  { %9 = vsyncpa [#allocation4], 0  ;;  %s634_s9 = smov [#allocation2]   ;;  %s635_s11 = smov [#allocation5]  }
   0x3   :  { %s16_s10 = sshll.u32 %s634_s9, 4  ;;  %s25_s12 = sshll.u32 %s635_s11, 4  ;;  %s17_s10 = int_to_ptr.vmem [resolvable:$true] %s16_s10  ;;  %s657_s12 = int_to_ptr.vmem [resolvable:$true] %s25_s12 }
   0x4   :  { %s562_s15 = scalar_lea.hbm %s730_s0, 128 }
   0x5   :  { %p563_p0 = scmp.ne.s32.totalorder %s730_s0, %s562_s15  ;;  %p566_p1 = scmp.lt.u32.totalorder %s562_s15, %s730_s0 }
   0x7   :  { %p568_p2 = pnand %p566_p1, %p563_p0 }
   0x9   :  { %571 = shalt.err (!%p568_p2)
}
   0xa   :  { %s572_s20 = scalar_lea.vmem %s17_s10, 128  ;;  %p577_p4 = scmp.lt.s32.totalorder %s17_s10, %s17_s10 }
   0xb   :  { %p573_p3 = scmp.ne.s32.totalorder %s17_s10, %s572_s20  ;;  %p578_p5 = scmp.lt.s32.totalorder %s572_s20, %s572_s20 }
   0xd   :  { %p579_p6 = por %p578_p5, %p577_p4 }
   0xf   :  { %p580_p7 = pnand %p579_p6, %p573_p3 }
  0x11   :  { %583 = shalt.err (!%p580_p7)
}
  0x12   :  { %19 = dma.hbm_to_vmem [thread:$0]  %s730_s0, 128, %s17_s10, [#allocation3]  }
  0x13   :  { %s584_s25 = scalar_lea.hbm %s731_s1, 6144 }
  0x14   :  { %p585_p8 = scmp.ne.s32.totalorder %s731_s1, %s584_s25  ;;  %p588_p9 = scmp.lt.u32.totalorder %s584_s25, %s731_s1 }
  0x16   :  { %p590_p10 = pnand %p588_p9, %p585_p8 }
  0x18   :  { %593 = shalt.err (!%p590_p10)
}
  0x19   :  { %s594_s30 = scalar_lea.vmem %s657_s12, 6144  ;;  %p599_p12 = scmp.lt.s32.totalorder %s657_s12, %s657_s12 }
  0x1a   :  { %p595_p11 = scmp.ne.s32.totalorder %s657_s12, %s594_s30  ;;  %p600_p13 = scmp.lt.s32.totalorder %s594_s30, %s594_s30 }
  0x1c   :  { %p601_p0 = por %p600_p13, %p599_p12 }
  0x1e   :  { %p602_p1 = pnand %p601_p0, %p595_p11 }
  0x20   :  { %605 = shalt.err (!%p602_p1)
}
  0x21   :  { %s636_s0 = smov 128   ;;  %s637_s3 = smov 8  }
  0x22   :  { %31 = dma.hbm_to_vmem [thread:$0]  %s731_s1, 6144, %s657_s12, [#allocation6], %s636_s0, %s636_s0, %s637_s3  }
  0x23   :  { %628 = dma.done.wait [#allocation3], 128  }
  0x24   :  { %629 = vsyncadd [#allocation3], 4294967168 }
  0x25   :  { %630 = dma.done.wait [#allocation6], 6144  }
  0x26   :  { %631 = vsyncadd [#allocation6], 4294961152  ;;  %v638_v0 = vmov 0.0|0.0   ;;  %vm639_vm0 = vmmov 0   ;;  %v640_v1 = vmov 0.0   ;;  %v39_v2 = vld [vmem:[#allocation5] sm:$0xff] }
  0x27   :  { %480 = vmatprep.subr.bf16.mxu0 %v638_v0  ;;  %407 = vmatprep.mubr.msk.f32.mxu0 %vm639_vm0, %v640_v1  ;;  %v40_v3 = vld [vmem:[#allocation5 + $0x8] sm:$0xff]  ;;  %v41_v4 = vld [vmem:[#allocation5 + $0x10] sm:$0xff]  ;;  %v42_v6 = vld [vmem:[#allocation5 + $0x18] sm:$0xff]  ;;  %s641_s1 = smov [#allocation7]  }
  0x28   :  { %504 = vmatprep.subr.bf16.mxu1 %v638_v0  ;;  %442 = vmatprep.mubr.msk.f32.mxu1 %vm639_vm0, %v640_v1  ;;  %v481_v5 = vpack.c.bf16 %v40_v3, %v39_v2  ;;  %v484_v7 = vpack.c.bf16 %v42_v6, %v41_v4  ;;  %v43_v8 = vld [vmem:[#allocation5 + $0x20] sm:$0xff]  ;;  %v44_v9 = vld [vmem:[#allocation5 + $0x28] sm:$0xff]  ;;  %v128_v12 = vld [vmem:[#allocation5 + $0x90] sm:$0xff]  ;;  %s314_s6 = sshll.u32 %s641_s1, 4  ;;  %s315_s6 = int_to_ptr.vmem [resolvable:$true] %s314_s6 }
  0x29   :  { %v126_v10 = vld [vmem:[#allocation5 + $0x80] sm:$0xff]  ;;  %v127_v11 = vld [vmem:[#allocation5 + $0x88] sm:$0xff]  ;;  %v129_v13 = vld [vmem:[#allocation5 + $0x98] sm:$0xff]  ;;  %v487_v14 = vpack.c.bf16 %v44_v9, %v43_v8  ;;  %s606_s7 = scalar_lea.vmem %s315_s6, 128  ;;  %p611_p3 = scmp.lt.s32.totalorder %s315_s6, %s315_s6 }
  0x2a   :  { %482 = vmatpush3.bf16.msra.mxu0 %v481_v5  ;;  %v505_v15 = vpack.c.bf16 %v127_v11, %v126_v10  ;;  %v45_v16 = vld [vmem:[#allocation5 + $0x30] sm:$0xff]  ;;  %v46_v17 = vld [vmem:[#allocation5 + $0x38] sm:$0xff]  ;;  %v508_v18 = vpack.c.bf16 %v129_v13, %v128_v12  ;;  %v130_v19 = vld [vmem:[#allocation5 + $0xa0] sm:$0xff]  ;;  %p607_p2 = scmp.ne.s32.totalorder %s315_s6, %s606_s7  ;;  %p612_p4 = scmp.lt.s32.totalorder %s606_s7, %s606_s7 }
  0x2b   :  { %483 = vmatprep.subr.bf16.mxu0 %v638_v0  ;;  %v131_v20 = vld [vmem:[#allocation5 + $0xa8] sm:$0xff]  ;;  %v490_v21 = vpack.c.bf16 %v46_v17, %v45_v16  ;;  %v47_v22 = vld [vmem:[#allocation5 + $0x40] sm:$0xff]  ;;  %v132_v25 = vld [vmem:[#allocation5 + $0xb0] sm:$0xff] }
  0x2c   :  { %506 = vmatpush3.bf16.msra.mxu1 %v505_v15  ;;  %v48_v23 = vld [vmem:[#allocation5 + $0x48] sm:$0xff]  ;;  %v511_v24 = vpack.c.bf16 %v131_v20, %v130_v19  ;;  %v133_v26 = vld [vmem:[#allocation5 + $0xb8] sm:$0xff]  ;;  %v49_v28 = vld [vmem:[#allocation5 + $0x50] sm:$0xff]  ;;  %p613_p5 = por %p612_p4, %p611_p3 }
  0x2d   :  { %507 = vmatprep.subr.bf16.mxu1 %v638_v0  ;;  %v493_v27 = vpack.c.bf16 %v48_v23, %v47_v22  ;;  %v50_v29 = vld [vmem:[#allocation5 + $0x58] sm:$0xff]  ;;  %v514_v30 = vpack.c.bf16 %v133_v26, %v132_v25  ;;  %v134_v31 = vld [vmem:[#allocation5 + $0xc0] sm:$0xff]  ;;  %v135_v32 = vld [vmem:[#allocation5 + $0xc8] sm:$0xff]  ;;  %v299_v23 = vlaneseq }
  0x2e   :  { %485 = vmatpush3.bf16.msra.mxu0 %v484_v7  ;;  %v496_v33 = vpack.c.bf16 %v50_v29, %v49_v28  ;;  %v51_v34 = vld [vmem:[#allocation5 + $0x60] sm:$0xff]  ;;  %v52_v35 = vld [vmem:[#allocation5 + $0x68] sm:$0xff]  ;;  %v517_v36 = vpack.c.bf16 %v135_v32, %v134_v31  ;;  %v136_v37 = vld [vmem:[#allocation5 + $0xd0] sm:$0xff]  ;;  %p614_p6 = pnand %p613_p5, %p607_p2 }
  0x2f   :  { %486 = vmatprep.subr.bf16.mxu0 %v638_v0  ;;  %v137_v38 = vld [vmem:[#allocation5 + $0xd8] sm:$0xff]  ;;  %v499_v39 = vpack.c.bf16 %v52_v35, %v51_v34  ;;  %v53_v40 = vld [vmem:[#allocation5 + $0x70] sm:$0xff]  ;;  %v138_v43 = vld [vmem:[#allocation5 + $0xe0] sm:$0xff] }
  0x30   :  { %509 = vmatpush3.bf16.msra.mxu1 %v508_v18  ;;  %v54_v41 = vld [vmem:[#allocation5 + $0x78] sm:$0xff]  ;;  %v520_v42 = vpack.c.bf16 %v137_v38, %v136_v37  ;;  %v139_v44 = vld [vmem:[#allocation5 + $0xe8] sm:$0xff]  ;;  %v140_v48 = vld [vmem:[#allocation5 + $0xf0] sm:$0xff] }
  0x31   :  { %510 = vmatprep.subr.bf16.mxu1 %v638_v0  ;;  %v502_v45 = vpack.c.bf16 %v54_v41, %v53_v40  ;;  %v523_v46 = vpack.c.bf16 %v139_v44, %v138_v43  ;;  %v38_v47 = vld [vmem:[#allocation2] sm:$0xff]  ;;  %v213_v51 = vld [vmem:[#allocation5 + $0x100] sm:$0xff]  ;;  %v214_v52 = vld [vmem:[#allocation5 + $0x108] sm:$0xff] }
  0x32   :  { %488 = vmatpush3.bf16.msra.mxu0 %v487_v14  ;;  %v141_v49 = vld [vmem:[#allocation5 + $0xf8] sm:$0xff]  ;;  %v215_v53 = vld [vmem:[#allocation5 + $0x110] sm:$0xff]  ;;  %v529_v54 = vpack.c.bf16 %v214_v52, %v213_v51  ;;  %v217_v57 = vld [vmem:[#allocation5 + $0x120] sm:$0xff] }
  0x33   :  { %489 = vmatprep.subr.bf16.mxu0 %v638_v0  ;;  %v526_v50 = vpack.c.bf16 %v141_v49, %v140_v48  ;;  %v216_v55 = vld [vmem:[#allocation5 + $0x118] sm:$0xff]  ;;  %v218_v58 = vld [vmem:[#allocation5 + $0x128] sm:$0xff]  ;;  %v219_v60 = vld [vmem:[#allocation5 + $0x130] sm:$0xff] }
  0x34   :  { %512 = vmatpush3.bf16.msra.mxu1 %v511_v24  ;;  %v532_v56 = vpack.c.bf16 %v216_v55, %v215_v53  ;;  %v535_v59 = vpack.c.bf16 %v218_v58, %v217_v57  ;;  %v220_v61 = vld [vmem:[#allocation5 + $0x138] sm:$0xff]  ;;  %v221_v63 = vld [vmem:[#allocation5 + $0x140] sm:$0xff]  ;;  %v223_v3 = vld [vmem:[#allocation5 + $0x150] sm:$0xff] }
  0x35   :  { %513 = vmatprep.subr.bf16.mxu1 %v638_v0  ;;  %v538_v62 = vpack.c.bf16 %v220_v61, %v219_v60  ;;  %v224_v4 = vld [vmem:[#allocation5 + $0x158] sm:$0xff]  ;;  %v225_v6 = vld [vmem:[#allocation5 + $0x160] sm:$0xff]  ;;  %v226_v7 = vld [vmem:[#allocation5 + $0x168] sm:$0xff] }
  0x36   :  { %491 = vmatpush3.bf16.msra.mxu0 %v490_v21  ;;  %v544_v5 = vpack.c.bf16 %v224_v4, %v223_v3  ;;  %v547_v8 = vpack.c.bf16 %v226_v7, %v225_v6  ;;  %v227_v12 = vld [vmem:[#allocation5 + $0x170] sm:$0xff]  ;;  %v228_v13 = vld [vmem:[#allocation5 + $0x178] sm:$0xff] }
  0x37   :  { %492 = vmatprep.subr.bf16.mxu0 %v638_v0  ;;  %v550_v14 = vpack.c.bf16 %v228_v13, %v227_v12 }
  0x38   :  { %515 = vmatpush3.bf16.msra.mxu1 %v514_v30 }
  0x39   :  { %516 = vmatprep.subr.bf16.mxu1 %v638_v0 }
  0x3a   :  { %494 = vmatpush3.bf16.msra.mxu0 %v493_v27 }
  0x3b   :  { %495 = vmatprep.subr.bf16.mxu0 %v638_v0 }
  0x3c   :  { %518 = vmatpush3.bf16.msra.mxu1 %v517_v36 }
  0x3d   :  { %519 = vmatprep.subr.bf16.mxu1 %v638_v0 }
  0x3e   :  { %497 = vmatpush3.bf16.msra.mxu0 %v496_v33 }
  0x3f   :  { %498 = vmatprep.subr.bf16.mxu0 %v638_v0 }
  0x40   :  { %521 = vmatpush3.bf16.msra.mxu1 %v520_v42 }
  0x41   :  { %522 = vmatprep.subr.bf16.mxu1 %v638_v0 }
  0x42   :  { %500 = vmatpush3.bf16.msra.mxu0 %v499_v39 }
  0x43   :  { %501 = vmatprep.subr.bf16.mxu0 %v638_v0 }
  0x44   :  { %524 = vmatpush3.bf16.msra.mxu1 %v523_v46 }
  0x45   :  { %525 = vmatprep.subr.bf16.mxu1 %v638_v0 }
  0x46   :  { %503 = vmatpush3.bf16.msra.mxu0 %v502_v45 }
  0x47   :  { %528 = vmatprep.subr.bf16.mxu0 %v638_v0 }
  0x48   :  { %527 = vmatpush3.bf16.msra.mxu1 %v526_v50 }
  0x49   :  { %408 = vmatmul.mubr.f32.vlgmr.msra.gmra.mrb[0].mxu0 %v38_v47 }
  0x4a   :  { %477 = vmatprep.mubr.msk.f32.mxu0 %vm639_vm0, %v640_v1  ;;  %530 = vmatpush3.bf16.msra.mxu0 %v529_v54  ;;  %v222_v1 = vld [vmem:[#allocation5 + $0x148] sm:$0xff] }
  0x4b   :  { %531 = vmatprep.subr.bf16.mxu0 %v638_v0  ;;  %v541_v2 = vpack.c.bf16 %v222_v1, %v221_v63 }
  0x4e   :  { %533 = vmatpush3.bf16.msra.mxu0 %v532_v56 }
  0x4f   :  { %534 = vmatprep.subr.bf16.mxu0 %v638_v0 }
  0x52   :  { %536 = vmatpush3.bf16.msra.mxu0 %v535_v59 }
  0x53   :  { %537 = vmatprep.subr.bf16.mxu0 %v638_v0 }
  0x56   :  { %539 = vmatpush3.bf16.msra.mxu0 %v538_v62 }
  0x57   :  { %540 = vmatprep.subr.bf16.mxu0 %v638_v0 }
  0x5a   :  { %542 = vmatpush3.bf16.msra.mxu0 %v541_v2 }
  0x5b   :  { %543 = vmatprep.subr.bf16.mxu0 %v638_v0 }
  0x5e   :  { %545 = vmatpush3.bf16.msra.mxu0 %v544_v5 }
  0x5f   :  { %546 = vmatprep.subr.bf16.mxu0 %v638_v0 }
  0x62   :  { %548 = vmatpush3.bf16.msra.mxu0 %v547_v8 }
  0x63   :  { %549 = vmatprep.subr.bf16.mxu0 %v638_v0  ;;  %v300_v0 = vand.u32 127, %v299_v23 }
  0x65   :  { %vm305_vm1 = vcmp.ge.s32.totalorder %v300_v0, 4 }
  0x66   :  { %551 = vmatpush3.bf16.msra.mxu0 %v550_v14 }
 0x11c   :  { %v121_v9 = vpop.f32.mrb[0].mxu0 }
 0x11d   :  { %v125_v10 = vmax.f32 %v121_v9, 0.0  ;;  %v409_v11 = vpop.f32.mrb[1].mxu0 }
 0x11f   :  { %443 = vmatmul.mubr.f32.vlgmr.msra.gmra.mrb[0].mxu1 %v125_v10 }
 0x1f2   :  { %v208_v15 = vpop.f32.mrb[0].mxu1 }
 0x1f3   :  { %v212_v16 = vmax.f32 %v208_v15, 0.0  ;;  %v444_v17 = vpop.f32.mrb[1].mxu1 }
 0x1f5   :  { %478 = vmatmul.mubr.f32.vlgmr.msra.gmra.mrb[2].mxu0 %v212_v16 }
 0x2c8   :  { %v295_v18 = vpop.f32.mrb[2].mxu0 }
 0x2c9   :  { %v301_v19 = vmax.f32 %v295_v18, -20.0  ;;  %v479_v20 = vpop.f32.mrb[3].mxu0 }
 0x2cb   :  { %v302_v21 = vmin.f32 %v301_v19, 2.0 }
 0x2cd   :  { %v303_v22 = vmul.f32 1.442695, %v302_v21 }
 0x2cf   :  { %560 = vpow2.f32 %v303_v22 }
 0x2d9   :  { %v561_v24 = vpop.eup %560 }
 0x2da   :  { %v306_v25 = vsel %vm305_vm1, %v561_v24, %v295_v18 }
 0x2db   :  { %307 = vst [vmem:[#allocation7] sm:$0xff] %v306_v25 }
 0x2dc   :  { %617 = shalt.err (!%p614_p6)
}
 0x2dd   :  { %s618_s10 = scalar_lea.hbm %s732_s2, 128 }
 0x2de   :  { %p619_p7 = scmp.ne.s32.totalorder %s732_s2, %s618_s10  ;;  %p622_p8 = scmp.lt.u32.totalorder %s618_s10, %s732_s2 }
 0x2e0   :  { %p624_p9 = pnand %p622_p8, %p619_p7 }
 0x2e2   :  { %627 = shalt.err (!%p624_p9)
}
 0x2e3   :  { %317 = dma.vmem_to_hbm [thread:$0]  %s315_s6, 128, %s732_s2, [#allocation4]  }
 0x2e4   :  { %632 = dma.done.wait [#allocation4], 128  }
 0x2e5   :  { %633 = vsyncadd [#allocation4], 4294967168 }
 0x2e6   :  { %321 = vsyncpa [#allocation3], 1 }
 0x2e7   :  { %322 = vsyncpa [#allocation6], 1 }
 0x2e8   :  { %323 = vsyncpa [#allocation4], 1 }

</bundles_post_ra>
